<compile_context>
chip_gen: v6e
topology: v6e:2x2x1
jax: 0.10.0
libtpu: 0.0.40
codegen_flags: <defaults>
</compile_context>

<pallas_src>
import math

import jax
import jax.numpy as jnp
from jax.experimental import pallas as pl
from jax.experimental.pallas import tpu as pltpu


def _gfp_flat_kernel(x_ref, e_ref, w_ref, p_ref, o_ref):
    # x_ref: (TB, D) f32
    # e_ref: (D, DEp) f32   0/1 block-diagonal expansion matrix
    # w_ref: (1, DEp) f32   tiled [W, W] per d-block (zero in lane padding)
    # p_ref: (1, DEp) f32   phase row: 0.0 -> sin lane, pi/2 -> cos lane
    # o_ref: (TB, DEp)
    x = x_ref[...]

    # Expand x to the flattened lane-dense layout: x_exp[b, d*E + j] = x[b, d].
    # HIGHEST precision => exact f32 reconstruction through the MXU (rhs is 0/1).
    x_exp = jnp.dot(
        x,
        e_ref[...],
        precision=jax.lax.Precision.HIGHEST,
        preferred_element_type=jnp.float32,
    )

    # Single transcendental per element: cos(t) == sin(t + pi/2).
    proj = x_exp * w_ref[...] + p_ref[...]
    o_ref[...] = jnp.sin(proj).astype(o_ref.dtype)


def _gfp_wide_kernel(x_ref, w_ref, p_ref, o_ref):
    # x_ref: (TR, 1) f32 — one (b, d) scalar per row of the (B*D, E) view
    # w_ref: (1, E) f32   [W, W]
    # p_ref: (1, E) f32   phase row
    # o_ref: (TR, E)
    proj = x_ref[...] * w_ref[...] + p_ref[...]   # (TR,1)x(1,E) VPU broadcast
    o_ref[...] = jnp.sin(proj).astype(o_ref.dtype)


def _pick_tile_rows(n_rows, row_bytes, budget_bytes):
    """Budget-derived row tile: 8-row sublane aligned, capped by the per-buffer
    VMEM budget, and >= 2 grid steps when the row count allows (so the
    'parallel' axis can be sharded across v7x's two TensorCores)."""
    if n_rows <= 8:
        return n_rows                                   # full-dim block is legal
    tb = max(8, (budget_bytes // max(row_bytes, 1)) // 8 * 8)
    tb = min(tb, n_rows)
    if tb >= n_rows and n_rows >= 16:
        tb = max(8, (pl.cdiv(n_rows, 2) // 8) * 8)      # force >= 2 grid steps
    return tb


def gaussian_fourier_projection_encoder(x, W, x_shape, flatten=True,
                                        out_dtype=jnp.float32):
    """JAX/Pallas equivalent of GaussianFourierProjectionEncoder.forward.

    x: (B, D) float32
    W: (embed_dim//2,) float32, already scaled by scale * 2 * pi
    returns (B, D*embed_dim) if flatten else (B, D, embed_dim)
    """
    assert x.ndim == 2, "expected (B, D) input, matching the module's doc"
    B, D = x.shape
    half = W.shape[0]
    E = 2 * half                 # embed_dim
    DE = D * E

    x = x.astype(jnp.float32)
    W = W.astype(jnp.float32)

    w2 = jnp.concatenate([W, W])                                     # (E,)
    phase = jnp.concatenate([jnp.zeros((half,), jnp.float32),
                             jnp.full((half,), math.pi / 2,
                                      dtype=jnp.float32)])           # (E,)

    # Per-output-buffer VMEM budget.  Double-buffered output + tiny resident
    # rows stays well inside the 32 MiB scoped default on all generations
    # (v7x has only 64 MiB physical VMEM per TC).
    BUDGET = 2 << 20

    if E % 128 == 0:
        # Wide-embedding path: no MXU expansion needed.  Operate on the
        # (B*D, E) row view; the final (B, D*E) reshape is the exact torch
        # flatten semantics (row-major contiguous).
        N = B * D
        x_rows = x.reshape(N, 1)
        w_row = w2[None, :]
        p_row = phase[None, :]
        TR = _pick_tile_rows(N, E * 4, BUDGET)
        out = pl.pallas_call(
            _gfp_wide_kernel,
            out_shape=jax.ShapeDtypeStruct((N, E), out_dtype),
            grid=(pl.cdiv(N, TR),),
            in_specs=[
                pl.BlockSpec((TR, 1), lambda i: (i, 0)),   # x rows, pipelined
                pl.BlockSpec((1, E), lambda i: (0, 0)),    # W row, resident
                pl.BlockSpec((1, E), lambda i: (0, 0)),    # phase row, resident
            ],
            out_specs=pl.BlockSpec((TR, E), lambda i: (i, 0)),
            compiler_params=pltpu.CompilerParams(
                dimension_semantics=("parallel",)),
        )(x_rows, w_row, p_row)
        out = out.reshape(B, DE)
    else:
        # Small-embedding path (e.g. embed_dim=32): flatten D*E onto the lane
        # axis so stores are full-width; pad lanes to a multiple of 128.
        DEp = pl.cdiv(DE, 128) * 128
        pad = DEp - DE
        w_row = jnp.tile(w2, D)
        p_row = jnp.tile(phase, D)
        expand = jnp.repeat(jnp.eye(D, dtype=jnp.float32), E, axis=1)  # (D, DE)
        if pad:
            w_row = jnp.concatenate([w_row, jnp.zeros((pad,), jnp.float32)])
            p_row = jnp.concatenate([p_row, jnp.zeros((pad,), jnp.float32)])
            expand = jnp.concatenate(
                [expand, jnp.zeros((D, pad), jnp.float32)], axis=1)
        w_row = w_row[None, :]
        p_row = p_row[None, :]

        TB = _pick_tile_rows(B, DEp * 4, BUDGET)
        out = pl.pallas_call(
            _gfp_flat_kernel,
            out_shape=jax.ShapeDtypeStruct((B, DEp), out_dtype),
            grid=(pl.cdiv(B, TB),),
            in_specs=[
                pl.BlockSpec((TB, D), lambda i: (i, 0)),    # x tile, pipelined
                pl.BlockSpec((D, DEp), lambda i: (0, 0)),   # expansion, resident
                pl.BlockSpec((1, DEp), lambda i: (0, 0)),   # W row, resident
                pl.BlockSpec((1, DEp), lambda i: (0, 0)),   # phase row, resident
            ],
            out_specs=pl.BlockSpec((TB, DEp), lambda i: (i, 0)),
            compiler_params=pltpu.CompilerParams(
                dimension_semantics=("parallel",)),
        )(x, expand, w_row, p_row)
        if pad:
            out = out[:, :DE]

    if not flatten:
        # torch keeps (B, D, embed_dim) when flatten=False; contiguous reshape.
        out = out.reshape(B, D, E)
    return out


if __name__ == "__main__":
    # module hyper-params (matching the PyTorch spec's (B, D) input contract)
    embed_dim = 32
    x_shape = (4,)          # D = 4  -> flattened lane width D*embed_dim = 128
    scale = 30.0
    flatten = True

    B, D = 2, x_shape[0]

    key = jax.random.PRNGKey(0)
    kW, kx = jax.random.split(key)

    # deterministic parameter init: W = randn(embed_dim//2) * scale * 2 * pi
    W = jax.random.normal(kW, (embed_dim // 2,), dtype=jnp.float32) * (scale * 2.0 * math.pi)
    x = jax.random.normal(kx, (B, D), dtype=jnp.float32)

    out = gaussian_fourier_projection_encoder(x, W, x_shape, flatten=flatten)
    out = jax.block_until_ready(out)

    # pure-JAX reference (same as the torch forward)
    proj_ref = x[..., None] * W[None, None, :]
    ref = jnp.concatenate([jnp.sin(proj_ref), jnp.cos(proj_ref)], axis=-1)
    if flatten:
        ref = ref.reshape(B, D * embed_dim)

    assert out.shape == ref.shape
    # sin/cos arguments reach several hundred radians (scale=30 * 2*pi).  The
    # cos->sin(t+pi/2) fold adds up to ~|t|*eps (~5e-5) argument rounding on
    # top of f32 range-reduction ULP differences vs the XLA cos path, so allow
    # a few 1e-4 of absolute headroom.
    assert jnp.allclose(out, ref, atol=5e-4, rtol=1e-4), float(
        jnp.max(jnp.abs(out - ref)))

    print("KERNEL_OK")
</pallas_src>

<mosaic_0001>
module attributes {stable_mosaic.version = 11 : i64} {
  func.func @_gfp_flat_kernel(%arg0: i32, %arg1: memref<2x4xf32, #tpu.memory_space<vmem>>, %arg2: memref<4x128xf32, #tpu.memory_space<vmem>>, %arg3: memref<1x128xf32, #tpu.memory_space<vmem>>, %arg4: memref<1x128xf32, #tpu.memory_space<vmem>>, %arg5: memref<2x128xf32, #tpu.memory_space<vmem>>) attributes {dimension_semantics = [#tpu.dimension_semantics<parallel>], iteration_bounds = array<i64: 1>, scalar_prefetch = 0 : i64, scratch_operands = 0 : i64, tpu.core_type = #tpu.core_type<tc>, window_params = [{transform_indices = @transform_0, window_bounds = array<i64: 2, 4>}, {pipeline_mode = #tpu.pipeline_mode<synchronous>, transform_indices = @transform_1, window_bounds = array<i64: 4, 128>}, {pipeline_mode = #tpu.pipeline_mode<synchronous>, transform_indices = @transform_2, window_bounds = array<i64: 1, 128>}, {pipeline_mode = #tpu.pipeline_mode<synchronous>, transform_indices = @transform_3, window_bounds = array<i64: 1, 128>}, {transform_indices = @transform_4, window_bounds = array<i64: 2, 128>}]} {
    %c0 = arith.constant 0 : index
    %c0_0 = arith.constant 0 : index
    %0 = vector.load %arg1[%c0, %c0_0] : memref<2x4xf32, #tpu.memory_space<vmem>>, vector<2x4xf32>
    %c0_1 = arith.constant 0 : index
    %c0_2 = arith.constant 0 : index
    %1 = vector.load %arg2[%c0_1, %c0_2] : memref<4x128xf32, #tpu.memory_space<vmem>>, vector<4x128xf32>
    %cst = arith.constant dense<0.000000e+00> : vector<2x128xf32>
    %2 = tpu.matmul %0, %1, %cst {dimension_numbers = #tpu.dot_dimension_numbers<[1], [0], [0], [1], [0, 0, 1, 1], [], []>, precision = #tpu.contract_precision<fp32>} : vector<2x4xf32>, vector<4x128xf32>, vector<2x128xf32> -> vector<2x128xf32>
    %c0_3 = arith.constant 0 : index
    %c0_4 = arith.constant 0 : index
    %3 = vector.load %arg3[%c0_3, %c0_4] : memref<1x128xf32, #tpu.memory_space<vmem>>, vector<1x128xf32>
    %4 = vector.broadcast %3 : vector<1x128xf32> to vector<2x128xf32>
    %5 = arith.mulf %2, %4 : vector<2x128xf32>
    %c0_5 = arith.constant 0 : index
    %c0_6 = arith.constant 0 : index
    %6 = vector.load %arg4[%c0_5, %c0_6] : memref<1x128xf32, #tpu.memory_space<vmem>>, vector<1x128xf32>
    %7 = vector.broadcast %6 : vector<1x128xf32> to vector<2x128xf32>
    %8 = arith.addf %5, %7 : vector<2x128xf32>
    %9 = math.sin %8 : vector<2x128xf32>
    %c0_7 = arith.constant 0 : index
    %c0_8 = arith.constant 0 : index
    %10 = vector.load %arg5[%c0_7, %c0_8] : memref<2x128xf32, #tpu.memory_space<vmem>>, vector<2x128xf32>
    tpu.vector_store %arg5[%c0_7, %c0_8], %9 {strides = array<i32>} : memref<2x128xf32, #tpu.memory_space<vmem>>, vector<2x128xf32>,
    return
  }
  func.func @transform_0(%arg0: i32) -> (i32, i32) {
    %c0_i32 = arith.constant 0 : i32
    %c0_i32_0 = arith.constant 0 : i32
    return %arg0, %c0_i32 : i32, i32
  }
  func.func @transform_1(%arg0: i32) -> (i32, i32) {
    %c0_i32 = arith.constant 0 : i32
    %c0_i32_0 = arith.constant 0 : i32
    %c0_i32_1 = arith.constant 0 : i32
    return %c0_i32, %c0_i32_0 : i32, i32
  }
  func.func @transform_2(%arg0: i32) -> (i32, i32) {
    %c0_i32 = arith.constant 0 : i32
    %c0_i32_0 = arith.constant 0 : i32
    %c0_i32_1 = arith.constant 0 : i32
    return %c0_i32, %c0_i32_0 : i32, i32
  }
  func.func @transform_3(%arg0: i32) -> (i32, i32) {
    %c0_i32 = arith.constant 0 : i32
    %c0_i32_0 = arith.constant 0 : i32
    %c0_i32_1 = arith.constant 0 : i32
    return %c0_i32, %c0_i32_0 : i32, i32
  }
  func.func @transform_4(%arg0: i32) -> (i32, i32) {
    %c0_i32 = arith.constant 0 : i32
    %c0_i32_0 = arith.constant 0 : i32
    return %arg0, %c0_i32 : i32, i32
  }
}

</mosaic_0001>

<bundles_post_ra>
// kernel: tpu_custom_call.1
= control target key start
LH: loop header
LB: loop body
LE: loop exit
PB: predicated region body
PF: predicated region fallthrough
CT: control target
= control target key end

     0   :  { %9 = vsyncpa [#allocation3], 0  ;;  %s846_s0 = inlined_call_operand.hbm [shape: f32[2,4], index: 0, kind: input, shape index: {}]   ;;  %s847_s1 = inlined_call_operand.hbm [shape: f32[4,128], index: 1, kind: input, shape index: {}]   ;;  %s848_s2 = inlined_call_operand.vmem [shape: f32[1,128], index: 2, kind: input, shape index: {}]   ;;  %s849_s3 = inlined_call_operand.vmem [shape: f32[1,128], index: 3, kind: input, shape index: {}]   ;;  %s850_s4 = inlined_call_operand.hbm [shape: f32[2,128], index: 4, kind: output, shape index: {}]  }
   0x1   :  { %10 = vsyncpa [#allocation6], 0 }
   0x2   :  { %11 = vsyncpa [#allocation4], 0  ;;  %s768_s15 = smov [#allocation2]   ;;  %s769_s17 = smov [#allocation5]  }
   0x3   :  { %s18_s16 = sshll.u32 %s768_s15, 4  ;;  %s28_s18 = sshll.u32 %s769_s17, 4  ;;  %s19_s16 = int_to_ptr.vmem [resolvable:$true] %s18_s16  ;;  %s29_s18 = int_to_ptr.vmem [resolvable:$true] %s28_s18 }
   0x4   :  { %s710_s19 = scalar_lea.vmem %s19_s16, 32  ;;  %p715_p1 = scmp.lt.s32.totalorder %s19_s16, %s19_s16 }
   0x5   :  { %p711_p0 = scmp.ne.s32.totalorder %s19_s16, %s710_s19  ;;  %p716_p2 = scmp.lt.s32.totalorder %s710_s19, %s710_s19 }
   0x7   :  { %p717_p3 = por %p716_p2, %p715_p1 }
   0x9   :  { %p718_p4 = pnand %p717_p3, %p711_p0 }
   0xb   :  { %721 = shalt.err (!%p718_p4)
}
   0xc   :  { %21 = dma.hbm_to_vmem [thread:$0]  %s846_s0, 32, %s19_s16, [#allocation3]  }
   0xd   :  { %s730_s22 = scalar_lea.vmem %s29_s18, 64  ;;  %p735_p6 = scmp.lt.s32.totalorder %s29_s18, %s29_s18 }
   0xe   :  { %p731_p5 = scmp.ne.s32.totalorder %s29_s18, %s730_s22  ;;  %p736_p7 = scmp.lt.s32.totalorder %s730_s22, %s730_s22 }
  0x10   :  { %p737_p8 = por %p736_p7, %p735_p6 }
  0x12   :  { %p738_p9 = pnand %p737_p8, %p731_p5 }
  0x14   :  { %741 = shalt.err (!%p738_p9)
}
  0x15   :  { %31 = dma.hbm_to_vmem [thread:$0]  %s847_s1, 64, %s29_s18, [#allocation6]  }
  0x16   :  { %762 = dma.done.wait [#allocation3], 32  }
  0x17   :  { %763 = vsyncadd [#allocation3], 4294967264 }
  0x18   :  { %764 = dma.done.wait [#allocation6], 64  }
  0x19   :  { %765 = vsyncadd [#allocation6], 4294967232  ;;  %v770_v0 = vmov 0.0   ;;  %vm771_vm0 = vmmov 0   ;;  %vm48_vm1 = vcmask 1043456   ;;  %vm44_vm2 = vcmask 31744  }
  0x1a   :  { %653 = vmatprep.subr.mxu0 %v770_v0  ;;  %655 = vmatprep.mubr.msk.f32.mxu0 %vm771_vm0, %v770_v0  ;;  %v43_v1 = vld [vmem:[#allocation5] sm:$0xf]  ;;  %v42_v2 = vld [vmem:[#allocation2] sm:$0x3]  ;;  %v772_v46 = vmov 683565275  }
  0x1b   :  { %658 = vmatprep.subr.mxu1 %v770_v0  ;;  %660 = vmatprep.mubr.msk.f32.mxu1 %vm771_vm0, %v770_v0  ;;  %v50_v3 = vsel %vm48_vm1, %v43_v1, 0  ;;  %v46_v4 = vsel %vm44_vm2, %v42_v2, 0  ;;  %v635_v29 = vld [vmem:[%s848_s2] ss:$0 sm:$0xff]  ;;  %v773_v48 = vmov 2475754826  }
  0x1c   :  { %v83_v5 = vand.u32 4294901760, %v50_v3  ;;  %v118_v6 = vand.u32 4294901760, %v46_v4  ;;  %v636_v33 = vld [vmem:[%s849_s3] ss:$0 sm:$0xff]  ;;  %v774_v51 = vmov 2131351028  }
  0x1d   :  { %v775_v54 = vmov 2102212464   ;;  %v776_v57 = vmov 920167782   ;;  %v777_v60 = vmov 1326507024  }
  0x1e   :  { %654 = vmatpush3.msra.mxu0 %v83_v5  ;;  %v119_v7 = vsub.f32 %v46_v4, %v118_v6  ;;  %v160_v8 = vsub.f32 %v50_v3, %v83_v5  ;;  %s778_s2 = smov [#allocation7]  }
  0x1f   :  { %663 = vmatprep.subr.mxu0 %v770_v0  ;;  %s625_s3 = sshll.u32 %s778_s2, 4  ;;  %s626_s3 = int_to_ptr.vmem [resolvable:$true] %s625_s3 }
  0x20   :  { %v120_v9 = vand.u32 4294901760, %v119_v7  ;;  %v161_v10 = vand.u32 4294901760, %v160_v8  ;;  %s742_s27 = scalar_lea.vmem %s626_s3, 32  ;;  %p747_p11 = scmp.lt.s32.totalorder %s626_s3, %s626_s3 }
  0x21   :  { %p743_p10 = scmp.ne.s32.totalorder %s626_s3, %s742_s27  ;;  %p748_p12 = scmp.lt.s32.totalorder %s742_s27, %s742_s27 }
  0x22   :  { %v121_v11 = vsub.f32 %v119_v7, %v120_v9  ;;  %v162_v12 = vsub.f32 %v160_v8, %v161_v10 }
  0x23   :  { %p749_p13 = por %p748_p12, %p747_p11 }
  0x24   :  { %v122_v13 = vand.u32 4294901760, %v121_v11  ;;  %v163_v14 = vand.u32 4294901760, %v162_v12 }
  0x25   :  { %p750_p0 = pnand %p749_p13, %p743_p10 }
  0x26   :  { %656 = vmatmul.mubr.f32.vlgmr.msra.gmra.mxu0 %v122_v13  ;;  %659 = vmatpush3.msra.mxu1 %v163_v14 }
  0x27   :  { %664 = vmatpush3.msra.mxu0 %v160_v8  ;;  %661 = vmatmul.mubr.f32.vlgmr.msra.gmra.mxu1 %v118_v6 }
  0x28   :  { %668 = vmatprep.subr.mxu1 %v770_v0  ;;  %665 = vmatprep.mubr.msk.f32.mxu0 %vm771_vm0, %v770_v0 }
  0x29   :  { %669 = vmatpush3.msra.mxu1 %v83_v5  ;;  %673 = vmatprep.subr.mxu0 %v770_v0 }
  0x2a   :  { %666 = vmatmul.mubr.f32.vlgmr.msra.gmra.mxu0 %v119_v7  ;;  %670 = vmatprep.mubr.msk.f32.mxu1 %vm771_vm0, %v770_v0 }
  0x2b   :  { %674 = vmatpush3.msra.mxu0 %v161_v10  ;;  %671 = vmatmul.mubr.f32.vlgmr.msra.gmra.mxu1 %v120_v9 }
  0x2c   :  { %678 = vmatprep.subr.mxu1 %v770_v0  ;;  %675 = vmatprep.mubr.msk.f32.mxu0 %vm771_vm0, %v770_v0 }
  0x2d   :  { %679 = vmatpush3.msra.mxu1 %v83_v5  ;;  %680 = vmatprep.mubr.msk.f32.mxu1 %vm771_vm0, %v770_v0 }
  0x2e   :  { %676 = vmatmul.mubr.f32.vlgmr.msra.gmra.mxu0 %v118_v6 }
  0x2f   :  { %681 = vmatmul.mubr.f32.vlgmr.msra.gmra.mxu1 %v118_v6 }
  0xe6   :  { %v124_v15 = vpop.f32.mrf.mxu0 }
  0xe7   :  { %v200_v16 = vpop.f32.mrf.mxu1 }
  0xe8   :  { %v201_v17 = vadd.f32 %v200_v16, %v124_v15  ;;  %v657_v18 = vpop.f32.mrf.mxu0 }
  0xe9   :  { %v662_v19 = vpop.f32.mrf.mxu1 }
  0xea   :  { %v274_v20 = vpop.f32.mrf.mxu0 }
  0xeb   :  { %v275_v21 = vadd.f32 %v274_v20, %v201_v17  ;;  %v348_v22 = vpop.f32.mrf.mxu1 }
  0xec   :  { %v667_v23 = vpop.f32.mrf.mxu0 }
  0xed   :  { %v349_v24 = vadd.f32 %v348_v22, %v275_v21  ;;  %v672_v25 = vpop.f32.mrf.mxu1 }
  0xee   :  { %v422_v26 = vpop.f32.mrf.mxu0 }
  0xef   :  { %v423_v27 = vadd.f32 %v422_v26, %v349_v24  ;;  %v494_v28 = vpop.f32.mrf.mxu1 }
  0xf0   :  { %v677_v30 = vpop.f32.mrf.mxu0 }
  0xf1   :  { %v495_v31 = vadd.f32 %v494_v28, %v423_v27  ;;  %v682_v32 = vpop.f32.mrf.mxu1 }
  0xf3   :  { %v505_v34 = vmul.f32 %v635_v29, %v495_v31 }
  0xf5   :  { %v822_v35 = vadd.f32 %v636_v33, %v505_v34 }
  0xf7   :  { %v517_v36 = vand.u32 2139095040, %v822_v35  ;;  %v514_v40 = vand.u32 2147483647, %v822_v35  ;;  %vm516_vm10 = vcmp.lt.s32.totalorder %v822_v35, 0  ;;  %vm606_vm15 = vweird.f32 %v822_v35 }
  0xf9   :  { %v518_v37 = vshrl.u32 %v517_v36, 23  ;;  %v521_v44 = vand.u32 8388607, %v514_v40  ;;  %vm515_vm11 = vcmp.le.f32.partialorder %v514_v40, 0.7853982 }
  0xfb   :  { %v637_v38 = vadd.s32 4294967169, %v518_v37  ;;  %v522_v62 = vor.u32 8388608, %v521_v44 }
  0xfd   :  { %v524_v39 = vadd.s32 1, %v637_v38  ;;  %v562_v12 = vshll.u32 %v522_v62, 8 }
  0xff   :  { %vm525_vm3 = vcmp.gt.s32.totalorder %v524_v39, 0 }
 0x100   :  { %v526_v41 = vsel %vm525_vm3, %v524_v39, 0 }
 0x101   :  { %v528_v42 = vand.u32 31, %v526_v41  ;;  %v527_v45 = vshrl.u32 %v526_v41, 5 }
 0x103   :  { %v529_v43 = vsub.s32 32, %v528_v42  ;;  %v531_v47 = vshll.u32 %v772_v46, %v528_v42  ;;  %v534_v49 = vshll.u32 %v773_v48, %v528_v42  ;;  %v537_v53 = vshll.u32 %v774_v51, %v528_v42 }
 0x104   :  { %v540_v56 = vshll.u32 %v775_v54, %v528_v42  ;;  %v543_v59 = vshll.u32 %v776_v57, %v528_v42  ;;  %vm546_vm4 = vcmp.lt.s32.totalorder %v527_v45, 1  ;;  %vm549_vm5 = vcmp.lt.s32.totalorder %v527_v45, 4 }
 0x105   :  { %v532_v50 = vshrl.u32 %v773_v48, %v529_v43  ;;  %v535_v52 = vshrl.u32 %v774_v51, %v529_v43  ;;  %v538_v55 = vshrl.u32 %v775_v54, %v529_v43  ;;  %v541_v58 = vshrl.u32 %v776_v57, %v529_v43 }
 0x106   :  { %v544_v61 = vshrl.u32 %v777_v60, %v529_v43  ;;  %v530_v7 = vshrl.u32 %v772_v46, %v529_v43  ;;  %vm548_vm6 = vcmp.lt.s32.totalorder %v527_v45, 3  ;;  %vm547_vm7 = vcmp.lt.s32.totalorder %v527_v45, 2 }
 0x107   :  { %v533_v63 = vor.u32 %v532_v50, %v531_v47  ;;  %v536_v0 = vor.u32 %v535_v52, %v534_v49  ;;  %v539_v1 = vor.u32 %v538_v55, %v537_v53  ;;  %v542_v2 = vor.u32 %v541_v58, %v540_v56 }
 0x108   :  { %v545_v3 = vor.u32 %v544_v61, %v543_v59 }
 0x109   :  { %v551_v4 = vsel %vm549_vm5, %v539_v1, 2102212464  ;;  %v554_v5 = vsel %vm546_vm4, %v533_v63, %v536_v0  ;;  %v558_v6 = vsel %vm546_vm4, %v536_v0, %v539_v1  ;;  %v555_v8 = vsel %vm549_vm5, %v542_v2, 920167782 }
 0x10a   :  { %v559_v9 = vsel %vm549_vm5, %v545_v3, 1326507024  ;;  %v556_v10 = vsel %vm548_vm6, %v539_v1, %v555_v8  ;;  %v550_v13 = vsel %vm546_vm4, %v530_v7, %v533_v63  ;;  %v552_v14 = vsel %vm548_vm6, %v536_v0, %v551_v4 }
 0x10b   :  { %v560_v11 = vsel %vm548_vm6, %v542_v2, %v559_v9  ;;  %v557_v15 = vsel %vm547_vm7, %v554_v5, %v556_v10  ;;  %v553_v21 = vsel %vm547_vm7, %v550_v13, %v552_v14 }
 0x10c   :  { %v561_v16 = vsel %vm547_vm7, %v558_v6, %v560_v11  ;;  %v831_v19 = vmul.u32.u64.low %v562_v12, %v557_v15  ;;  %v832_v20 = vmul.u32.u64.high %v562_v12, %v557_v15, %v831_v19  ;;  %v569_v23 = vmul.u32 %v562_v12, %v553_v21 }
 0x10d   :  { %v828_v17 = vmul.u32.u64.low %v562_v12, %v561_v16  ;;  %v829_v18 = vmul.u32.u64.high %v562_v12, %v561_v16, %v828_v17 }
 0x10e   :  { %v572_v22 = vadd.s32 1, %v832_v20 }
 0x10f   :  { %vm571_vm8 = vc.u32 %v829_v18, %v831_v19  ;;  %v570_v36 = vadd.s32 %v831_v19, %v829_v18 }
 0x110   :  { %v573_v24 = vsel %vm571_vm8, %v572_v22, %v832_v20 }
 0x111   :  { %v574_v25 = vadd.s32 %v573_v24, %v569_v23 }
 0x113   :  { %v575_v26 = vadd.s32 536870912, %v574_v25 }
 0x115   :  { %v576_v27 = vshrl.u32 %v575_v26, 30 }
 0x117   :  { %v577_v28 = vshll.u32 %v576_v27, 30  ;;  %v600_v50 = vsub.s32 4, %v576_v27 }
 0x119   :  { %v578_v29 = vsub.s32 %v574_v25, %v577_v28  ;;  %v601_v53 = vsel %vm516_vm10, %v600_v50, %v576_v27 }
 0x11a   :  { %v603_v54 = vsel %vm515_vm11, 0, %v601_v53 }
 0x11b   :  { %v580_v30 = vsub.s32 0, %v578_v29  ;;  %v607_v55 = vadd.s32 3, %v603_v54 }
 0x11d   :  { %v638_v31 = vmin.u32 %v580_v30, %v578_v29  ;;  %v608_v56 = vand.u32 3, %v607_v55 }
 0x11f   :  { %v582_v32 = vclz %v638_v31  ;;  %vm613_vm12 = vcmp.eq.s32.totalorder %v608_v56, 2  ;;  %vm610_vm13 = vcmp.eq.s32.totalorder %v608_v56, 0  ;;  %vm609_vm14 = vcmp.lt.s32.totalorder %v608_v56, 2 }
 0x121   :  { %v639_v33 = vadd.s32 4294967294, %v582_v32 }
 0x123   :  { %vm640_vm9 = vcmp.lt.s32.totalorder %v639_v33, 0 }
 0x124   :  { %v585_v34 = vsel %vm640_vm9, 0, %v639_v33 }
 0x125   :  { %v586_v37 = vsub.s32 32, %v585_v34  ;;  %v590_v38 = vsub.s32 4294967266, %v585_v34  ;;  %v587_v39 = vshll.u32 %v578_v29, %v585_v34 }
 0x127   :  { %v588_v41 = vshrl.u32 %v570_v36, %v586_v37  ;;  %v591_v42 = vadd.s32 127, %v590_v38 }
 0x129   :  { %v589_v43 = vor.u32 %v588_v41, %v587_v39  ;;  %v592_v44 = vshll.u32 %v591_v42, 23 }
 0x12b   :  { %v593_v45 = vor.u32 4788187, %v592_v44  ;;  %v596_v47 = vcvt.s32.f32 %v589_v43 }
 0x12d   :  { %v594_v46 = vand.u32 2147483647, %v593_v45 }
 0x12f   :  { %v597_v48 = vmul.f32 %v596_v47, %v594_v46 }
 0x131   :  { %v598_v49 = vxor.u32 2147483648, %v597_v48 }
 0x133   :  { %v599_v51 = vsel %vm516_vm10, %v598_v49, %v597_v48 }
 0x134   :  { %v602_v52 = vsel %vm515_vm11, %v822_v35, %v599_v51 }
 0x135   :  { %698 = vcosq.f32 %v602_v52 }
 0x136   :  { %700 = vsinq.f32 %v602_v52 }
 0x142   :  { %v699_v57 = vpop.eup %698 }
 0x143   :  { %v701_v58 = vpop.eup %700  ;;  %v614_v59 = vxor.u32 2147483648, %v699_v57 }
 0x144   :  { %v611_v60 = vxor.u32 2147483648, %v701_v58 }
 0x145   :  { %v615_v61 = vsel %vm613_vm12, %v614_v59, %v701_v58 }
 0x146   :  { %v612_v40 = vsel %vm610_vm13, %v699_v57, %v611_v60 }
 0x147   :  { %v616_v62 = vsel %vm609_vm14, %v612_v40, %v615_v61 }
 0x148   :  { %v617_v63 = vsel %vm606_vm15, nan, %v616_v62 }
 0x149   :  { %618 = vst [vmem:[#allocation7] sm:$0x3] %v617_v63 }
 0x14a   :  { %753 = shalt.err (!%p750_p0)
}
 0x14b   :  { %628 = dma.vmem_to_hbm [thread:$0]  %s626_s3, 32, %s850_s4, [#allocation4]  }
 0x14c   :  { %766 = dma.done.wait [#allocation4], 32  }
 0x14d   :  { %767 = vsyncadd [#allocation4], 4294967264 }
 0x14e   :  { %632 = vsyncpa [#allocation3], 1 }
 0x14f   :  { %633 = vsyncpa [#allocation6], 1 }
 0x150   :  { %634 = vsyncpa [#allocation4], 1 }

</bundles_post_ra>
